<compile_context>
chip_gen: v5e
topology: v5e:2x2
jax: 0.10.0
libtpu: 0.0.40
codegen_flags: <defaults>
</compile_context>

<pallas_src>
import jax
import jax.numpy as jnp
from jax.experimental import pallas as pl
from jax.experimental.pallas import tpu as pltpu

EPS = 1e-6
LANE = 128            # vreg lane width
MAX_TILE_ROWS = 2048  # 2048 x 128 x 4B = 1 MiB per f32 input tile


def _make_kernel(tile_rows: int, n_valid: int, needs_mask: bool):
    """Build the Charbonnier reduction kernel for a given (static) tiling."""

    def kernel(x_ref, y_ref, o_ref, acc_ref):
        # acc_ref: (8, 128) f32 VMEM scratch, persistent across grid steps.
        @pl.when(pl.program_id(0) == 0)
        def _init():
            acc_ref[...] = jnp.zeros_like(acc_ref)

        # Upcast per-tile; inputs stay in their native dtype in HBM.
        d = x_ref[...].astype(jnp.float32) - y_ref[...].astype(jnp.float32)
        val = jnp.sqrt(d * d + jnp.float32(EPS))

        if needs_mask:
            # Mask elements past the true length n (tail padding / partial tile).
            row = jax.lax.broadcasted_iota(jnp.int32, (tile_rows, LANE), 0)
            col = jax.lax.broadcasted_iota(jnp.int32, (tile_rows, LANE), 1)
            gidx = (pl.program_id(0) * tile_rows + row) * LANE + col
            val = jnp.where(gidx < n_valid, val, jnp.float32(0.0))

        # Fold (tile_rows, 128) -> (8, 128) with vreg-wise VPU adds; defer the
        # expensive cross-lane/sublane reduce to the final step only.
        acc_ref[...] += val.reshape(tile_rows // 8, 8, LANE).sum(axis=0)

        @pl.when(pl.program_id(0) == pl.num_programs(0) - 1)
        def _finalize():
            o_ref[...] = jnp.sum(acc_ref[...], keepdims=True)

    return kernel


def charbonnier_loss(x, y, *, max_tile_rows: int = MAX_TILE_ROWS):
    """Pallas equivalent of torch.sqrt((X - Y) ** 2 + 1e-6).sum()."""
    assert x.shape == y.shape, (x.shape, y.shape)
    n = int(x.size)

    # Sublane-packing multiple for the narrowest input dtype (8=f32, 16=bf16, 32=int8).
    min_itemsize = min(jnp.dtype(x.dtype).itemsize, jnp.dtype(y.dtype).itemsize)
    sub = max(8, 32 // int(min_itemsize))
    chunk = sub * LANE

    xf = x.reshape(-1)
    yf = y.reshape(-1)
    pad = (-n) % chunk
    if pad:  # tiny (< sub*128 elems) tail pad, only when n is not a multiple of chunk
        xf = jnp.pad(xf, (0, pad))
        yf = jnp.pad(yf, (0, pad))
    total = n + pad
    rows = total // LANE                      # multiple of `sub` (>= 8)

    x2 = xf.reshape(rows, LANE)               # lane-dense 2-D slab (no dtype cast)
    y2 = yf.reshape(rows, LANE)

    tile_rows = min(max_tile_rows, rows)      # multiple of 8 (and of `sub`)
    grid = (pl.cdiv(rows, tile_rows),)
    needs_mask = (pad != 0) or (rows % tile_rows != 0)

    out = pl.pallas_call(
        _make_kernel(tile_rows, n, needs_mask),
        out_shape=jax.ShapeDtypeStruct((1, 1), jnp.float32),
        grid_spec=pltpu.PrefetchScalarGridSpec(
            num_scalar_prefetch=0,
            grid=grid,
            in_specs=[
                pl.BlockSpec((tile_rows, LANE), lambda i: (i, 0)),
                pl.BlockSpec((tile_rows, LANE), lambda i: (i, 0)),
            ],
            out_specs=pl.BlockSpec((1, 1), lambda i: (0, 0)),
            scratch_shapes=[pltpu.VMEM((8, LANE), jnp.float32)],
        ),
        compiler_params=pltpu.CompilerParams(
            dimension_semantics=("arbitrary",),
            vmem_limit_bytes=32 * 1024 * 1024,
        ),
    )(x2, y2)

    # TODO(synk): on v7x, shard the row range across both TensorCores (leading
    # "parallel" grid axis + per-core partial-sum output slots) for up to ~2x DMA
    # issue rate; single-core streaming is kept here for portability/simplicity.
    return out[0, 0]


if __name__ == "__main__":
    key = jax.random.PRNGKey(0)
    kx, ky = jax.random.split(key)

    def ref_loss(a, b):
        af = a.astype(jnp.float32)
        bf = b.astype(jnp.float32)
        return jnp.sqrt((af - bf) ** 2 + EPS).sum()

    # 1) NCHW image-restoration style inputs (f32).
    X = jax.random.normal(kx, (2, 4, 16, 16), dtype=jnp.float32)
    Y = jax.random.normal(ky, (2, 4, 16, 16), dtype=jnp.float32)
    loss = jax.block_until_ready(charbonnier_loss(X, Y))
    assert jnp.allclose(loss, ref_loss(X, Y), rtol=1e-5, atol=1e-5), (loss, ref_loss(X, Y))

    # 2) Ragged size (not a multiple of 128): exercises in-kernel tail masking.
    Xr = jax.random.normal(kx, (2, 3, 7, 5), dtype=jnp.float32)
    Yr = jax.random.normal(ky, (2, 3, 7, 5), dtype=jnp.float32)
    loss_r = jax.block_until_ready(charbonnier_loss(Xr, Yr))
    assert jnp.allclose(loss_r, ref_loss(Xr, Yr), rtol=1e-5, atol=1e-5), (loss_r, ref_loss(Xr, Yr))

    # 3) Force a multi-step grid to exercise cross-step accumulation.
    loss_m = jax.block_until_ready(charbonnier_loss(X, Y, max_tile_rows=8))
    assert jnp.allclose(loss_m, ref_loss(X, Y), rtol=1e-5, atol=1e-5), (loss_m, ref_loss(X, Y))

    # 4) Native sub-f32 dtype path (upcast happens per-tile inside the kernel).
    Xb = X.astype(jnp.bfloat16)
    Yb = Y.astype(jnp.bfloat16)
    loss_b = jax.block_until_ready(charbonnier_loss(Xb, Yb))
    assert jnp.allclose(loss_b, ref_loss(Xb, Yb), rtol=1e-5, atol=1e-5), (loss_b, ref_loss(Xb, Yb))

    print("KERNEL_OK")
</pallas_src>

<mosaic_0001>
module attributes {stable_mosaic.version = 11 : i64} {
  func.func @kernel(%arg0: i32, %arg1: memref<16x128xf32, #tpu.memory_space<vmem>>, %arg2: memref<16x128xf32, #tpu.memory_space<vmem>>, %arg3: memref<1x1xf32, #tpu.memory_space<vmem>>, %arg4: memref<8x128xf32, #tpu.memory_space<vmem>>) attributes {dimension_semantics = [#tpu.dimension_semantics<arbitrary>], iteration_bounds = array<i64: 1>, scalar_prefetch = 0 : i64, scratch_operands = 1 : i64, tpu.core_type = #tpu.core_type<tc>, window_params = [{transform_indices = @transform_0, window_bounds = array<i64: 16, 128>}, {transform_indices = @transform_1, window_bounds = array<i64: 16, 128>}, {pipeline_mode = #tpu.pipeline_mode<synchronous>, transform_indices = @transform_2, window_bounds = array<i64: 1, 1>}]} {
    %c0_i32 = arith.constant 0 : i32
    %0 = arith.cmpi eq, %arg0, %c0_i32 : i32
    %1 = arith.extui %0 : i1 to i32
    %c0_i32_0 = arith.constant 0 : i32
    %2 = arith.cmpi ne, %1, %c0_i32_0 : i32
    scf.if %2 {
      %cst_11 = arith.constant 0.000000e+00 : f32
      %18 = vector.broadcast %cst_11 : f32 to vector<8x128xf32>
      %c0_12 = arith.constant 0 : index
      %c0_13 = arith.constant 0 : index
      %19 = vector.load %arg4[%c0_12, %c0_13] : memref<8x128xf32, #tpu.memory_space<vmem>>, vector<8x128xf32>
      tpu.vector_store %arg4[%c0_12, %c0_13], %18 {strides = array<i32>} : memref<8x128xf32, #tpu.memory_space<vmem>>, vector<8x128xf32>,
    } else {
    }
    %c0 = arith.constant 0 : index
    %c0_1 = arith.constant 0 : index
    %3 = vector.load %arg1[%c0, %c0_1] : memref<16x128xf32, #tpu.memory_space<vmem>>, vector<16x128xf32>
    %c0_2 = arith.constant 0 : index
    %c0_3 = arith.constant 0 : index
    %4 = vector.load %arg2[%c0_2, %c0_3] : memref<16x128xf32, #tpu.memory_space<vmem>>, vector<16x128xf32>
    %5 = arith.subf %3, %4 : vector<16x128xf32>
    %6 = arith.mulf %5, %5 : vector<16x128xf32>
    %cst = arith.constant 9.99999997E-7 : f32
    %7 = vector.broadcast %cst : f32 to vector<16x128xf32>
    %8 = arith.addf %6, %7 : vector<16x128xf32>
    %9 = math.sqrt %8 : vector<16x128xf32>
    %c0_4 = arith.constant 0 : index
    %c0_5 = arith.constant 0 : index
    %10 = vector.load %arg4[%c0_4, %c0_5] : memref<8x128xf32, #tpu.memory_space<vmem>>, vector<8x128xf32>
    %11 = vector.shape_cast %9 : vector<16x128xf32> to vector<2x8x128xf32>
    %cst_6 = arith.constant dense<0.000000e+00> : vector<8x128xf32>
    %12 = vector.multi_reduction <add>, %11, %cst_6 [0] : vector<2x8x128xf32> to vector<8x128xf32>
    %13 = arith.addf %10, %12 : vector<8x128xf32>
    %c0_7 = arith.constant 0 : index
    %c0_8 = arith.constant 0 : index
    %14 = vector.load %arg4[%c0_7, %c0_8] : memref<8x128xf32, #tpu.memory_space<vmem>>, vector<8x128xf32>
    tpu.vector_store %arg4[%c0_7, %c0_8], %13 {strides = array<i32>} : memref<8x128xf32, #tpu.memory_space<vmem>>, vector<8x128xf32>,
    %c0_i32_9 = arith.constant 0 : i32
    %15 = arith.cmpi eq, %arg0, %c0_i32_9 : i32
    %16 = arith.extui %15 : i1 to i32
    %c0_i32_10 = arith.constant 0 : i32
    %17 = arith.cmpi ne, %16, %c0_i32_10 : i32
    scf.if %17 {
      %c0_11 = arith.constant 0 : index
      %c0_12 = arith.constant 0 : index
      %18 = vector.load %arg4[%c0_11, %c0_12] : memref<8x128xf32, #tpu.memory_space<vmem>>, vector<8x128xf32>
      %19 = vector.shape_cast %18 : vector<8x128xf32> to vector<1x8x128xf32>
      %cst_13 = arith.constant dense<0.000000e+00> : vector<1xf32>
      %20 = vector.multi_reduction <add>, %19, %cst_13 [1, 2] : vector<1x8x128xf32> to vector<1xf32>
      %21 = vector.shape_cast %20 : vector<1xf32> to vector<1x1x1xf32>
      %22 = vector.extract %21[0, 0, 0] : f32 from vector<1x1x1xf32>
      %23 = vector.broadcast %22 : f32 to vector<1x1xf32>
      %c0_14 = arith.constant 0 : index
      %c0_15 = arith.constant 0 : index
      %24 = vector.load %arg3[%c0_14, %c0_15] : memref<1x1xf32, #tpu.memory_space<vmem>>, vector<1x1xf32>
      tpu.vector_store %arg3[%c0_14, %c0_15], %23 {strides = array<i32>} : memref<1x1xf32, #tpu.memory_space<vmem>>, vector<1x1xf32>,
    } else {
    }
    return
  }
  func.func @transform_0(%arg0: i32) -> (i32, i32) {
    %c0_i32 = arith.constant 0 : i32
    %c0_i32_0 = arith.constant 0 : i32
    return %arg0, %c0_i32 : i32, i32
  }
  func.func @transform_1(%arg0: i32) -> (i32, i32) {
    %c0_i32 = arith.constant 0 : i32
    %c0_i32_0 = arith.constant 0 : i32
    return %arg0, %c0_i32 : i32, i32
  }
  func.func @transform_2(%arg0: i32) -> (i32, i32) {
    %c0_i32 = arith.constant 0 : i32
    %c0_i32_0 = arith.constant 0 : i32
    %c0_i32_1 = arith.constant 0 : i32
    return %c0_i32, %c0_i32_0 : i32, i32
  }
}

</mosaic_0001>

<bundles_post_ra>
// kernel: tpu_custom_call.1
= control target key start
LH: loop header
LB: loop body
LE: loop exit
PB: predicated region body
PF: predicated region fallthrough
CT: control target
= control target key end

     0   :  { %7 = vsyncpa [#allocation4], 0  ;;  %s239_s0 = inlined_call_operand.hbm [shape: f32[16,128], index: 0, kind: input, shape index: {}]   ;;  %s240_s1 = inlined_call_operand.hbm [shape: f32[16,128], index: 1, kind: input, shape index: {}]   ;;  %s241_s2 = inlined_call_operand.hbm [shape: f32[1,1], index: 2, kind: output, shape index: {}]  }
   0x1   :  { %8 = vsyncpa [#allocation7], 0 }
   0x2   :  { %9 = vsyncpa [#allocation5], 0  ;;  %s14_s11 = sshll.u32 %s239_s0, 4  ;;  %s210_s12 = smov [#allocation3]   ;;  %s15_s11 = int_to_ptr.hbm [resolvable:$true] %s14_s11 }
   0x3   :  { %s16_s13 = sshll.u32 %s210_s12, 4  ;;  %s27_s16 = sshll.u32 %s240_s1, 4  ;;  %s17_s13 = int_to_ptr.vmem [resolvable:$true] %s16_s13  ;;  %s28_s16 = int_to_ptr.hbm [resolvable:$true] %s27_s16 }
   0x4   :  { %s211_s17 = smov 128   ;;  %s212_s18 = smov 8  }
   0x5   :  { %22 = dma.hbm_to_vmem [thread:$0]  %s15_s11, 256, %s17_s13, [#allocation4], %s211_s17, %s211_s17, %s212_s18  }
   0x6   :  { %s213_s19 = smov [#allocation6]  }
   0x7   :  { %s29_s20 = sshll.u32 %s213_s19, 4  ;;  %s30_s20 = int_to_ptr.vmem [resolvable:$true] %s29_s20 }
   0x8   :  { %35 = dma.hbm_to_vmem [thread:$0]  %s28_s16, 256, %s30_s20, [#allocation7], %s211_s17, %s211_s17, %s212_s18  }
   0x9   :  { %204 = dma.done.wait [#allocation4], 256  }
   0xa   :  { %205 = vsyncadd [#allocation4], 4294967040 }
   0xb   :  { %206 = dma.done.wait [#allocation7], 256  }
   0xc   :  { %207 = vsyncadd [#allocation7], 4294967040  ;;  %v49_v0 = vld [vmem:[#allocation3] sm:$0xff]  ;;  %v50_v1 = vld [vmem:[#allocation3 + $0x8] sm:$0xff]  ;;  %s214_s0 = smov [#allocation8]   ;;  %s110_s23 = sshll.u32 %s241_s2, 4  ;;  %s111_s23 = int_to_ptr.hbm [resolvable:$true] %s110_s23 }
   0xd   :  { %v51_v2 = vld [vmem:[#allocation6] sm:$0xff]  ;;  %v52_v3 = vld [vmem:[#allocation6 + $0x8] sm:$0xff]  ;;  %s108_s1 = sshll.u32 %s214_s0, 4  ;;  %vm101_vm4 = vcmask 0   ;;  %s109_s1 = int_to_ptr.vmem [resolvable:$true] %s108_s1 }
   0xe   :  { %v53_v4 = vsub.f32 %v49_v0, %v51_v2  ;;  %v54_v5 = vsub.f32 %v50_v1, %v52_v3 }
  0x10   :  { %v55_v6 = vmul.f32 %v53_v4, %v53_v4  ;;  %v56_v7 = vmul.f32 %v54_v5, %v54_v5 }
  0x12   :  { %v57_v8 = vadd.f32 1e-06, %v55_v6  ;;  %v58_v9 = vadd.f32 1e-06, %v56_v7 }
  0x14   :  { %128 = vrsqrt.f32 %v57_v8  ;;  %vm66_vm0 = vcmp.eq.f32.partialorder %v57_v8, inf  ;;  %v69_v21 = vand.u32 2147483648, %v57_v8  ;;  %vm68_vm1 = vcmp.eq.f32.partialorder %v57_v8, 0.0 }
  0x15   :  { %130 = vrsqrt.f32 %v58_v9  ;;  %vm78_vm2 = vcmp.eq.f32.partialorder %v58_v9, inf  ;;  %v81_v24 = vand.u32 2147483648, %v58_v9  ;;  %vm80_vm3 = vcmp.eq.f32.partialorder %v58_v9, 0.0 }
  0x1a   :  { %v129_v10 = vpop.eup %128 }
  0x1b   :  { %v131_v11 = vpop.eup %130  ;;  %v60_v12 = vmul.f32 %v129_v10, %v57_v8 }
  0x1c   :  { %v72_v13 = vmul.f32 %v131_v11, %v58_v9 }
  0x1d   :  { %v61_v14 = vmul.f32 %v129_v10, %v60_v12 }
  0x1e   :  { %v73_v15 = vmul.f32 %v131_v11, %v72_v13 }
  0x1f   :  { %v62_v16 = vmul.f32 0.5, %v61_v14 }
  0x20   :  { %v74_v17 = vmul.f32 0.5, %v73_v15 }
  0x21   :  { %v63_v18 = vsub.f32 1.5, %v62_v16 }
  0x22   :  { %v75_v19 = vsub.f32 1.5, %v74_v17 }
  0x23   :  { %v64_v20 = vmul.f32 %v129_v10, %v63_v18 }
  0x24   :  { %v76_v22 = vmul.f32 %v131_v11, %v75_v19 }
  0x25   :  { %v65_v23 = vmul.f32 %v64_v20, %v57_v8 }
  0x26   :  { %v77_v25 = vmul.f32 %v76_v22, %v58_v9 }
  0x27   :  { %v67_v26 = vsel %vm66_vm0, %v57_v8, %v65_v23 }
  0x28   :  { %v70_v27 = vsel %vm68_vm1, %v69_v21, %v67_v26  ;;  %v79_v28 = vsel %vm78_vm2, %v58_v9, %v77_v25 }
  0x29   :  { %v82_v29 = vsel %vm80_vm3, %v81_v24, %v79_v28 }
  0x2a   :  { %v84_v30 = vadd.f32 %v82_v29, %v70_v27 }
  0x2c   :  { %91 = vadd.xlane.f32.xlu0 %v84_v30 }
  0x9f   :  { %v92_v31 = vpop.xlane.xlu0 %91 }
  0xa0   :  { %v93_v32 = vrot.slane %v92_v31, 4 }
  0xa2   :  { %v94_v33 = vadd.f32 %v93_v32, %v92_v31 }
  0xa4   :  { %v95_v34 = vrot.slane %v94_v33, 2 }
  0xa6   :  { %v96_v35 = vadd.f32 %v95_v34, %v94_v33 }
  0xa8   :  { %v97_v36 = vrot.slane %v96_v35, 1 }
  0xaa   :  { %v98_v37 = vadd.f32 %v97_v36, %v96_v35 }
  0xac   :  { %121 = vpush %v98_v37 }
  0xdd   :  { %s122_s24 = spop %121 }
  0xde   :  { %v100_v38 = vstv %s122_s24 }
  0xdf   :  { %102 = vst.msk [vmem:[#allocation8] sm:$0x1] %vm101_vm4, %v100_v38 }
  0xe0   :  { %113 = dma.vmem_to_hbm [thread:$0]  %s109_s1, 16, %s111_s23, [#allocation5]  }
  0xe1   :  { %208 = dma.done.wait [#allocation5], 16  }
  0xe2   :  { %209 = vsyncadd [#allocation5], 4294967280 }
  0xe3   :  { %118 = vsyncpa [#allocation4], 1 }
  0xe4   :  { %119 = vsyncpa [#allocation7], 1 }
  0xe5   :  { %120 = vsyncpa [#allocation5], 1 }

</bundles_post_ra>
